<compile_context>
chip_gen: v5e
topology: v5e:2x2
jax: 0.10.0
libtpu: 0.0.40
codegen_flags: <defaults>
</compile_context>

<pallas_src>
import math
from functools import partial

import jax
import jax.numpy as jnp
from jax.experimental import pallas as pl
from jax.experimental.pallas import tpu as pltpu

NEG_INF = -1e30  # finite "minus infinity" (avoids inf - inf -> NaN)


# ----------------------------- tile helpers --------------------------------

def _pick_tile(dim, preferred):
    """Largest tile <= preferred that evenly divides dim; falls back to the
    full dimension (Mosaic accepts block == full extent for any size)."""
    if dim <= preferred:
        return dim
    t = preferred
    while t >= 16:
        if dim % t == 0:
            return t
        t //= 2
    return dim


# ----------------------------- linear kernels ------------------------------

def _matmul_kernel(x_ref, w_ref, o_ref, acc_ref):
    @pl.when(pl.program_id(2) == 0)
    def _():
        acc_ref[...] = jnp.zeros_like(acc_ref)

    acc_ref[...] += jnp.dot(x_ref[...], w_ref[...],
                            preferred_element_type=jnp.float32)

    @pl.when(pl.program_id(2) == pl.num_programs(2) - 1)
    def _():
        o_ref[...] = acc_ref[...].astype(o_ref.dtype)


def _matmul_bias_kernel(x_ref, w_ref, b_ref, o_ref, acc_ref):
    @pl.when(pl.program_id(2) == 0)
    def _():
        acc_ref[...] = jnp.zeros_like(acc_ref)

    acc_ref[...] += jnp.dot(x_ref[...], w_ref[...],
                            preferred_element_type=jnp.float32)

    @pl.when(pl.program_id(2) == pl.num_programs(2) - 1)
    def _():
        o_ref[...] = (acc_ref[...] + b_ref[...].astype(jnp.float32)
                      ).astype(o_ref.dtype)


def pallas_linear(x2d, w, b=None, *, tm=256, tn=256, tk=512):
    """y = x2d @ w (+ b).  x2d: [M, K], w: [K, N], b: [N] or None.

    Tiled/pipelined: grid (M/tm, N/tn, K/tk) with an f32 VMEM accumulator
    resident across the K ("arbitrary") axis; M/N axes marked "parallel" for
    megacore sharding.  Tile targets keep double-buffered inputs + the
    accumulator well under the 32 MiB scoped-VMEM limit on v5e/v6e/v7x.
    """
    M, K = x2d.shape
    _, N = w.shape
    tm = _pick_tile(M, tm)
    tn = _pick_tile(N, tn)
    tk = _pick_tile(K, tk)
    grid = (M // tm, N // tn, K // tk)

    itemsize = x2d.dtype.itemsize
    cost = pl.CostEstimate(
        flops=int(2 * M * N * K),
        transcendentals=0,
        bytes_accessed=int((M * K + K * N + M * N) * itemsize))

    in_specs = [pl.BlockSpec((tm, tk), lambda i, j, k: (i, k)),
                pl.BlockSpec((tk, tn), lambda i, j, k: (k, j))]
    args = [x2d, w]
    if b is not None:
        kernel = _matmul_bias_kernel
        in_specs.append(pl.BlockSpec((1, tn), lambda i, j, k: (0, j)))
        args.append(b.reshape(1, N))
    else:
        kernel = _matmul_kernel

    return pl.pallas_call(
        kernel,
        out_shape=jax.ShapeDtypeStruct((M, N), x2d.dtype),
        grid=grid,
        in_specs=in_specs,
        out_specs=pl.BlockSpec((tm, tn), lambda i, j, k: (i, j)),
        scratch_shapes=[pltpu.VMEM((tm, tn), jnp.float32)],
        compiler_params=pltpu.CompilerParams(
            dimension_semantics=("parallel", "parallel", "arbitrary"),
            vmem_limit_bytes=32 * 1024 * 1024),
        cost_estimate=cost,
    )(*args)


# ----------------------------- flash attention -----------------------------

def _flash_attn_kernel(q_ref, k_ref, v_ref, o_ref, m_sc, l_sc, acc_sc, *,
                       scale, tq, tkv, group):
    # q_ref block: (1, 1, group, tq, D)    -- all heads of one GQA group
    # k_ref/v_ref block: (1, 1, tkv, D)    -- shared KV block for the group
    qi = pl.program_id(2)
    kv = pl.program_id(3)
    nkv = pl.num_programs(3)

    @pl.when(kv == 0)
    def _():
        m_sc[...] = jnp.full_like(m_sc, NEG_INF)
        l_sc[...] = jnp.zeros_like(l_sc)
        acc_sc[...] = jnp.zeros_like(acc_sc)

    q_start = qi * tq
    kv_start = kv * tkv

    # Skip KV blocks that lie strictly above the causal diagonal of this
    # Q block (halves matmul work for long sequences).
    @pl.when(kv_start < q_start + tq)
    def _():
        k = k_ref[0, 0]                       # [tkv, D], native dtype -> MXU
        v = v_ref[0, 0]
        rows = jax.lax.broadcasted_iota(jnp.int32, (tq, tkv), 0)
        cols = jax.lax.broadcasted_iota(jnp.int32, (tq, tkv), 1)
        causal = (kv_start + cols) <= (q_start + rows)  # hoisted across heads

        # Static unroll over the GQA group: K/V DMA + causal mask amortized
        # over `group` heads.
        for g in range(group):
            q = q_ref[0, 0, g]                # [tq, D]
            # contract the last dims directly (no explicit K transpose)
            s = jax.lax.dot_general(
                q, k, (((1,), (1,)), ((), ())),
                preferred_element_type=jnp.float32) * scale   # [tq, tkv] f32
            s = jnp.where(causal, s, NEG_INF)

            m_prev = m_sc[g]                                   # [tq, 1]
            m_new = jnp.maximum(m_prev, jnp.max(s, axis=-1, keepdims=True))
            alpha = jnp.exp(m_prev - m_new)
            p = jnp.exp(s - m_new)
            l_sc[g] = alpha * l_sc[g] + jnp.sum(p, axis=-1, keepdims=True)
            acc_sc[g] = alpha * acc_sc[g] + jnp.dot(
                p.astype(v.dtype), v, preferred_element_type=jnp.float32)
            m_sc[g] = m_new

    # Finalize: single normalization per output tile (EUP approx reciprocal,
    # off the VALU critical path).
    @pl.when(kv == nkv - 1)
    def _():
        o_ref[0, 0] = (acc_sc[...] *
                       pl.reciprocal(l_sc[...], approx=True)
                       ).astype(o_ref.dtype)


def pallas_flash_attention(q, k, v):
    """Causal GQA flash attention.

    q: [B, NG, G, S, D]   (G = query heads per KV group)
    k, v: [B, NG, S, D]
    returns [B, NG, G, S, D]
    """
    B, NG, G, S, D = q.shape
    scale = 1.0 / math.sqrt(D)
    tq = _pick_tile(S, 256)
    tkv = _pick_tile(S, 256)
    nq = S // tq
    nkv = S // tkv
    NH = NG * G

    kernel = partial(_flash_attn_kernel, scale=scale, tq=tq, tkv=tkv, group=G)
    itemsize = q.dtype.itemsize
    cost = pl.CostEstimate(
        flops=int(4 * B * NH * S * S * D),
        transcendentals=int(B * NH * S * S),
        bytes_accessed=int((2 * B * NH * S * D + 2 * B * NG * S * D) * itemsize))

    return pl.pallas_call(
        kernel,
        out_shape=jax.ShapeDtypeStruct((B, NG, G, S, D), q.dtype),
        grid=(B, NG, nq, nkv),
        in_specs=[
            pl.BlockSpec((1, 1, G, tq, D), lambda b, g, qi, kv: (b, g, 0, qi, 0)),
            pl.BlockSpec((1, 1, tkv, D), lambda b, g, qi, kv: (b, g, kv, 0)),
            pl.BlockSpec((1, 1, tkv, D), lambda b, g, qi, kv: (b, g, kv, 0)),
        ],
        out_specs=pl.BlockSpec((1, 1, G, tq, D),
                               lambda b, g, qi, kv: (b, g, 0, qi, 0)),
        scratch_shapes=[
            pltpu.VMEM((G, tq, 1), jnp.float32),   # running max m
            pltpu.VMEM((G, tq, 1), jnp.float32),   # running denom l
            pltpu.VMEM((G, tq, D), jnp.float32),   # running numerator acc
        ],
        compiler_params=pltpu.CompilerParams(
            dimension_semantics=("parallel", "parallel", "parallel", "arbitrary"),
            vmem_limit_bytes=32 * 1024 * 1024),
        cost_estimate=cost,
    )(q, k, v)


# ----------------------------- forward pass --------------------------------

def sharded_attention_forward(hidden_states, params, cfg):
    """hidden_states: [S, B, H].  Returns (output [S, B, H], bias [H])."""
    S, B, H = hidden_states.shape
    nh = cfg["num_attention_heads"]
    ng = cfg["num_query_groups"]
    hd = cfg["kv_channels"]
    G = nh // ng                                   # query heads per KV group
    qp = hd * nh                                   # query_projection_size

    # --- ColumnParallelLinear: query_key_value (bias applied) ---
    x2d = hidden_states.reshape(S * B, H)
    mixed = pallas_linear(x2d, params["w_qkv"], params["b_qkv"])
    mixed = mixed.reshape(S, B, ng, (G + 2) * hd)

    # torch.split sizes: [G*hd, hd, hd] along dim 3
    q, k, v = jnp.split(mixed, [G * hd, G * hd + hd], axis=3)

    # Grouped layout for the flash kernel: q -> [B, ng, G, S, hd];
    # k, v -> [B, ng, S, hd] (equivalent to permute(1,2,0,3) + GQA grouping).
    q5 = jnp.transpose(q.reshape(S, B, ng, G, hd), (1, 2, 3, 0, 4))
    k4 = jnp.transpose(k, (1, 2, 0, 3))
    v4 = jnp.transpose(v, (1, 2, 0, 3))

    ctx = pallas_flash_attention(q5, k4, v4)       # [B, ng, G, S, hd]

    # permute(2,0,1,3) in head-flattened terms -> [S, B, nh, hd] -> [S*B, qp]
    ctx = jnp.transpose(ctx, (3, 0, 1, 2, 4)).reshape(S * B, qp)

    # --- RowParallelLinearNoComm: dense (skip_bias_add=True) ---
    out = pallas_linear(ctx, params["w_dense"])
    out = out.reshape(S, B, H)
    # TODO(synk): attention dropout (config.attention_dropout) omitted; it is 0.0 here.
    return out, params["b_dense"]


# ----------------------------- reference (plain JAX) ------------------------

def reference_forward(hidden_states, params, cfg):
    S, B, H = hidden_states.shape
    nh, ng, hd = cfg["num_attention_heads"], cfg["num_query_groups"], cfg["kv_channels"]
    qpg = nh // ng
    qp = hd * nh
    with jax.default_matmul_precision("highest"):
        mixed = hidden_states.reshape(S * B, H) @ params["w_qkv"] + params["b_qkv"]
        mixed = mixed.reshape(S, B, ng, (qpg + 2) * hd)
        q, k, v = jnp.split(mixed, [qpg * hd, qpg * hd + hd], axis=3)
        q = q.reshape(S, B, nh, hd)
        qb = jnp.transpose(q, (1, 2, 0, 3))
        kb = jnp.repeat(jnp.transpose(k, (1, 2, 0, 3)), qpg, axis=1)
        vb = jnp.repeat(jnp.transpose(v, (1, 2, 0, 3)), qpg, axis=1)
        s = jnp.einsum("bhqd,bhkd->bhqk", qb, kb) / math.sqrt(hd)
        mask = jnp.tril(jnp.ones((S, S), dtype=bool))
        s = jnp.where(mask, s, -jnp.inf)
        p = jax.nn.softmax(s, axis=-1)
        ctx = jnp.einsum("bhqk,bhkd->bhqd", p, vb)
        ctx = jnp.transpose(ctx, (2, 0, 1, 3)).reshape(S, B, qp)
        out = ctx.reshape(S * B, qp) @ params["w_dense"]
    return out.reshape(S, B, H), params["b_dense"]


# ----------------------------- main ------------------------------------------

if __name__ == "__main__":
    # small config consistent with the module
    cfg = dict(
        hidden_size=32,
        num_attention_heads=4,
        num_query_groups=2,      # group_query_attention = True
        kv_channels=8,           # head_dim
        seq=8,
        batch=2,
    )
    S, B, H = cfg["seq"], cfg["batch"], cfg["hidden_size"]
    nh, ng, hd = cfg["num_attention_heads"], cfg["num_query_groups"], cfg["kv_channels"]
    qp = hd * nh                 # query_projection_size = 32
    kvp = hd * ng                # kv_projection_size    = 16
    qkv_out = qp + 2 * kvp       # 64

    key = jax.random.PRNGKey(0)
    k0, k1, k2, k3, k4 = jax.random.split(key, 5)
    params = {
        "w_qkv": 0.02 * jax.random.normal(k0, (H, qkv_out), jnp.float32),
        "b_qkv": 0.02 * jax.random.normal(k1, (qkv_out,), jnp.float32),
        "w_dense": 0.02 * jax.random.normal(k2, (qp, H), jnp.float32),
        "b_dense": 0.02 * jax.random.normal(k3, (H,), jnp.float32),
    }
    hidden_states = jax.random.normal(k4, (S, B, H), jnp.float32)

    out, bias = sharded_attention_forward(hidden_states, params, cfg)
    out = jax.block_until_ready(out)
    bias = jax.block_until_ready(bias)

    ref_out, ref_bias = reference_forward(hidden_states, params, cfg)
    assert out.shape == (S, B, H) and bias.shape == (H,)
    # tolerance accounts for the EUP approx-reciprocal softmax normalization
    assert jnp.allclose(out, ref_out, atol=2e-4, rtol=2e-3), (
        float(jnp.max(jnp.abs(out - ref_out))))
    assert jnp.allclose(bias, ref_bias)

    print("KERNEL_OK")
</pallas_src>

<mosaic_0001>
module attributes {stable_mosaic.version = 11 : i64} {
  func.func @_matmul_bias_kernel(%arg0: i32, %arg1: i32, %arg2: i32, %arg3: memref<16x32xf32, #tpu.memory_space<vmem>>, %arg4: memref<32x64xf32, #tpu.memory_space<vmem>>, %arg5: memref<1x64xf32, #tpu.memory_space<vmem>>, %arg6: memref<16x64xf32, #tpu.memory_space<vmem>>, %arg7: memref<16x64xf32, #tpu.memory_space<vmem>>) attributes {dimension_semantics = [#tpu.dimension_semantics<parallel>, #tpu.dimension_semantics<parallel>, #tpu.dimension_semantics<arbitrary>], iteration_bounds = array<i64: 1, 1, 1>, scalar_prefetch = 0 : i64, scratch_operands = 1 : i64, tpu.core_type = #tpu.core_type<tc>, window_params = [{transform_indices = @transform_0, window_bounds = array<i64: 16, 32>}, {transform_indices = @transform_1, window_bounds = array<i64: 32, 64>}, {transform_indices = @transform_2, window_bounds = array<i64: 1, 64>}, {transform_indices = @transform_3, window_bounds = array<i64: 16, 64>}]} {
    %c0_i32 = arith.constant 0 : i32
    %0 = arith.cmpi eq, %arg2, %c0_i32 : i32
    %1 = arith.extui %0 : i1 to i32
    %c0_i32_0 = arith.constant 0 : i32
    %2 = arith.cmpi ne, %1, %c0_i32_0 : i32
    scf.if %2 {
      %cst_10 = arith.constant 0.000000e+00 : f32
      %12 = vector.broadcast %cst_10 : f32 to vector<16x64xf32>
      %c0_11 = arith.constant 0 : index
      %c0_12 = arith.constant 0 : index
      %13 = vector.load %arg7[%c0_11, %c0_12] : memref<16x64xf32, #tpu.memory_space<vmem>>, vector<16x64xf32>
      tpu.vector_store %arg7[%c0_11, %c0_12], %12 {strides = array<i32>} : memref<16x64xf32, #tpu.memory_space<vmem>>, vector<16x64xf32>,
    } else {
    }
    %c0 = arith.constant 0 : index
    %c0_1 = arith.constant 0 : index
    %3 = vector.load %arg7[%c0, %c0_1] : memref<16x64xf32, #tpu.memory_space<vmem>>, vector<16x64xf32>
    %c0_2 = arith.constant 0 : index
    %c0_3 = arith.constant 0 : index
    %4 = vector.load %arg3[%c0_2, %c0_3] : memref<16x32xf32, #tpu.memory_space<vmem>>, vector<16x32xf32>
    %c0_4 = arith.constant 0 : index
    %c0_5 = arith.constant 0 : index
    %5 = vector.load %arg4[%c0_4, %c0_5] : memref<32x64xf32, #tpu.memory_space<vmem>>, vector<32x64xf32>
    %cst = arith.constant dense<0.000000e+00> : vector<16x64xf32>
    %6 = tpu.matmul %4, %5, %cst {dimension_numbers = #tpu.dot_dimension_numbers<[1], [0], [0], [1], [0, 0, 1, 1], [], []>} : vector<16x32xf32>, vector<32x64xf32>, vector<16x64xf32> -> vector<16x64xf32>
    %7 = arith.addf %3, %6 : vector<16x64xf32>
    %c0_6 = arith.constant 0 : index
    %c0_7 = arith.constant 0 : index
    %8 = vector.load %arg7[%c0_6, %c0_7] : memref<16x64xf32, #tpu.memory_space<vmem>>, vector<16x64xf32>
    tpu.vector_store %arg7[%c0_6, %c0_7], %7 {strides = array<i32>} : memref<16x64xf32, #tpu.memory_space<vmem>>, vector<16x64xf32>,
    %c0_i32_8 = arith.constant 0 : i32
    %9 = arith.cmpi eq, %arg2, %c0_i32_8 : i32
    %10 = arith.extui %9 : i1 to i32
    %c0_i32_9 = arith.constant 0 : i32
    %11 = arith.cmpi ne, %10, %c0_i32_9 : i32
    scf.if %11 {
      %c0_10 = arith.constant 0 : index
      %c0_11 = arith.constant 0 : index
      %12 = vector.load %arg7[%c0_10, %c0_11] : memref<16x64xf32, #tpu.memory_space<vmem>>, vector<16x64xf32>
      %c0_12 = arith.constant 0 : index
      %c0_13 = arith.constant 0 : index
      %13 = vector.load %arg5[%c0_12, %c0_13] : memref<1x64xf32, #tpu.memory_space<vmem>>, vector<1x64xf32>
      %14 = vector.broadcast %13 : vector<1x64xf32> to vector<16x64xf32>
      %15 = arith.addf %12, %14 : vector<16x64xf32>
      %c0_14 = arith.constant 0 : index
      %c0_15 = arith.constant 0 : index
      %16 = vector.load %arg6[%c0_14, %c0_15] : memref<16x64xf32, #tpu.memory_space<vmem>>, vector<16x64xf32>
      tpu.vector_store %arg6[%c0_14, %c0_15], %15 {strides = array<i32>} : memref<16x64xf32, #tpu.memory_space<vmem>>, vector<16x64xf32>,
    } else {
    }
    return
  }
  func.func @transform_0(%arg0: i32, %arg1: i32, %arg2: i32) -> (i32, i32) {
    %c0_i32 = arith.constant 0 : i32
    return %arg0, %arg2 : i32, i32
  }
  func.func @transform_1(%arg0: i32, %arg1: i32, %arg2: i32) -> (i32, i32) {
    %c0_i32 = arith.constant 0 : i32
    return %arg2, %arg1 : i32, i32
  }
  func.func @transform_2(%arg0: i32, %arg1: i32, %arg2: i32) -> (i32, i32) {
    %c0_i32 = arith.constant 0 : i32
    %c0_i32_0 = arith.constant 0 : i32
    return %c0_i32, %arg1 : i32, i32
  }
  func.func @transform_3(%arg0: i32, %arg1: i32, %arg2: i32) -> (i32, i32) {
    %c0_i32 = arith.constant 0 : i32
    return %arg0, %arg1 : i32, i32
  }
}

</mosaic_0001>

<bundles_post_ra>
// kernel: tpu_custom_call.1
= control target key start
LH: loop header
LB: loop body
LE: loop exit
PB: predicated region body
PF: predicated region fallthrough
CT: control target
= control target key end

     0   :  { %8 = vsyncpa [#allocation4], 0  ;;  %s274_s0 = inlined_call_operand.hbm [shape: f32[16,32], index: 0, kind: input, shape index: {}]   ;;  %s275_s1 = inlined_call_operand.hbm [shape: f32[32,64], index: 1, kind: input, shape index: {}]   ;;  %s276_s2 = inlined_call_operand.vmem [shape: f32[1,64], index: 2, kind: input, shape index: {}]   ;;  %s277_s3 = inlined_call_operand.hbm [shape: f32[16,64], index: 3, kind: output, shape index: {}]  }
   0x1   :  { %9 = vsyncpa [#allocation7], 0 }
   0x2   :  { %10 = vsyncpa [#allocation5], 0  ;;  %s15_s14 = sshll.u32 %s274_s0, 4  ;;  %s221_s15 = smov [#allocation3]   ;;  %s16_s14 = int_to_ptr.hbm [resolvable:$true] %s15_s14 }
   0x3   :  { %s17_s16 = sshll.u32 %s221_s15, 4  ;;  %s28_s19 = sshll.u32 %s275_s1, 4  ;;  %s18_s16 = int_to_ptr.vmem [resolvable:$true] %s17_s16  ;;  %s29_s19 = int_to_ptr.hbm [resolvable:$true] %s28_s19 }
   0x4   :  { %s222_s20 = smov 128   ;;  %s223_s21 = smov 8  }
   0x5   :  { %23 = dma.hbm_to_vmem [thread:$0]  %s16_s14, 256, %s18_s16, [#allocation4], %s222_s20, %s222_s20, %s223_s21  }
   0x6   :  { %s224_s22 = smov [#allocation6]  }
   0x7   :  { %s30_s23 = sshll.u32 %s224_s22, 4  ;;  %s31_s23 = int_to_ptr.vmem [resolvable:$true] %s30_s23 }
   0x8   :  { %36 = dma.hbm_to_vmem [thread:$0]  %s29_s19, 512, %s31_s23, [#allocation7], %s222_s20, %s222_s20, %s223_s21  }
   0x9   :  { %215 = dma.done.wait [#allocation4], 256  }
   0xa   :  { %216 = vsyncadd [#allocation4], 4294967040 }
   0xb   :  { %217 = dma.done.wait [#allocation7], 512  }
   0xc   :  { %218 = vsyncadd [#allocation7], 4294966784  ;;  %vm51_vm0 = vcmask 523264   ;;  %v225_v0 = vmov 0.0   ;;  %v61_v1 = vld [vmem:[#allocation6 + $0x18] sm:$0xff]  ;;  %v60_v2 = vld [vmem:[#allocation6 + $0x10] sm:$0xff] }
   0xd   :  { %52 = vst.msk [vmem:[#allocation2] sm:$0xff] %vm51_vm0, %v225_v0  ;;  %81 = vmatpush.msra.mxu0 %v61_v1  ;;  %132 = vmatpush.msra.mxu1 %v61_v1  ;;  %v59_v3 = vld [vmem:[#allocation6 + $0x8] sm:$0xff]  ;;  %v58_v4 = vld [vmem:[#allocation6] sm:$0xff]  ;;  %v56_v5 = vld [vmem:[#allocation3] sm:$0xff]  ;;  %vm62_vm1 = vcmask 261120   ;;  %s226_s24 = smov [#allocation8]  }
   0xe   :  { %53 = vst.msk [vmem:[#allocation2 + $0x8] sm:$0xff] %vm51_vm0, %v225_v0  ;;  %v57_v6 = vld [vmem:[#allocation3 + $0x8] sm:$0xff]  ;;  %v142_v13 = vld [vmem:[%s276_s2] ss:$0 sm:$0xff]  ;;  %s114_s25 = sshll.u32 %s226_s24, 4  ;;  %s116_s28 = sshll.u32 %s277_s3, 4  ;;  %s115_s25 = int_to_ptr.vmem [resolvable:$true] %s114_s25  ;;  %s117_s28 = int_to_ptr.hbm [resolvable:$true] %s116_s28 }
   0xf   :  { %82 = vmatpush.msra.mxu0 %v60_v2  ;;  %133 = vmatpush.msra.mxu1 %v60_v2 }
  0x11   :  { %83 = vmatpush.msra.mxu0 %v59_v3  ;;  %134 = vmatpush.msra.mxu1 %v59_v3 }
  0x13   :  { %84 = vmatpush.msra.mxu0 %v58_v4  ;;  %135 = vmatpush.msra.mxu1 %v58_v4 }
  0x14   :  { %130 = vmatmul.msk.f32.vlgmr.msra.gmra.mxu0 %vm62_vm1, %v56_v5  ;;  %131 = vmatmul.msk.f32.vlgmr.msra.gmra.mxu1 %vm62_vm1, %v57_v6  ;;  %v54_v7 = vld [vmem:[#allocation2] sm:$0xff] }
  0x15   :  { %v55_v8 = vld [vmem:[#allocation2 + $0x8] sm:$0xff] }
  0x91   :  { %v86_v9 = vpop.f32.mrf.mxu0  ;;  %v89_v10 = vpop.f32.mrf.mxu1 }
  0x92   :  { %v92_v11 = vadd.f32 %v86_v9, %v54_v7  ;;  %v93_v12 = vadd.f32 %v89_v10, %v55_v8 }
  0x94   :  { %95 = vst.msk [vmem:[#allocation2] sm:$0xff] %vm51_vm0, %v92_v11 }
  0x95   :  { %96 = vst.msk [vmem:[#allocation2 + $0x8] sm:$0xff] %vm51_vm0, %v93_v12 }
  0x9b   :  { %v100_v14 = vld [vmem:[#allocation2] sm:$0xff] }
  0x9c   :  { %v101_v15 = vld [vmem:[#allocation2 + $0x8] sm:$0xff]  ;;  %v106_v16 = vadd.f32 %v142_v13, %v100_v14 }
  0x9d   :  { %v107_v17 = vadd.f32 %v142_v13, %v101_v15 }
  0x9e   :  { %108 = vst.msk [vmem:[#allocation8] sm:$0xff] %vm51_vm0, %v106_v16 }
  0x9f   :  { %109 = vst.msk [vmem:[#allocation8 + $0x8] sm:$0xff] %vm51_vm0, %v107_v17 }
  0xa0   :  { %122 = dma.vmem_to_hbm [thread:$0]  %s115_s25, 256, %s117_s28, [#allocation5], %s222_s20, %s222_s20, %s223_s21  }
  0xa1   :  { %219 = dma.done.wait [#allocation5], 256  }
  0xa2   :  { %220 = vsyncadd [#allocation5], 4294967040 }
  0xa3   :  { %127 = vsyncpa [#allocation4], 1 }
  0xa4   :  { %128 = vsyncpa [#allocation7], 1 }
  0xa5   :  { %129 = vsyncpa [#allocation5], 1 }

</bundles_post_ra>
